<compile_context>
chip_gen: v7x
topology: tpu7x:2x2x1
jax: 0.10.0
libtpu: 0.0.40
codegen_flags: <defaults>
</compile_context>

<pallas_src>
import functools

import jax
import jax.numpy as jnp
from jax.experimental import pallas as pl
from jax.experimental.pallas import tpu as pltpu

EPS = 1e-08
_LANE = 128


def _round_up(x, m):
    return (x + m - 1) // m * m


def _vmem_cap_bytes():
    try:
        return int(pltpu.get_tpu_info().vmem_capacity_bytes)
    except Exception:
        return 64 << 20  # conservative default (v7x physical VMEM)


# --------------------------------------------------------------------------
# Resident single-pass kernel: one (N, Kp) slab per grid step.
# --------------------------------------------------------------------------
def _gln_resident_kernel(y_ref, gamma_ref, beta_ref, o_ref, *, inv_nk):
    y = y_ref[...].astype(jnp.float32)            # (N, Kp)

    # Single sweep for both moments (padded columns are zero -> no bias,
    # denominator is the true N*K baked in as inv_nk).
    s = jnp.sum(y)
    sq = jnp.sum(y * y)
    mean = s * inv_nk
    var = jnp.maximum(sq * inv_nk - mean * mean, 0.0)
    inv_std = jax.lax.rsqrt(var + EPS)

    gamma = gamma_ref[...].astype(jnp.float32)    # (N, 1)
    beta = beta_ref[...].astype(jnp.float32)      # (N, 1)

    # Fused affine: 2 VPU ops per element instead of 4.
    scale = gamma * inv_std                       # (N, 1)
    shift = beta - mean * scale                   # (N, 1)
    o_ref[...] = (y * scale + shift).astype(o_ref.dtype)


# --------------------------------------------------------------------------
# K-tiled two-pass kernels.
# --------------------------------------------------------------------------
def _gln_stats_kernel(y_ref, sum_ref, sumsq_ref):
    k = pl.program_id(1)

    @pl.when(k == 0)
    def _():
        sum_ref[...] = jnp.zeros_like(sum_ref)
        sumsq_ref[...] = jnp.zeros_like(sumsq_ref)

    y = y_ref[...].astype(jnp.float32)            # (N, TK)
    sum_ref[...] += jnp.sum(y, keepdims=True)     # (1, 1)
    sumsq_ref[...] += jnp.sum(y * y, keepdims=True)


def _gln_norm_kernel(y_ref, gamma_ref, beta_ref, sum_ref, sumsq_ref, o_ref, *, inv_nk):
    y = y_ref[...].astype(jnp.float32)            # (N, TK)
    mean = sum_ref[...] * inv_nk                  # (1, 1)
    var = jnp.maximum(sumsq_ref[...] * inv_nk - mean * mean, 0.0)
    inv_std = jax.lax.rsqrt(var + EPS)            # (1, 1)

    scale = gamma_ref[...].astype(jnp.float32) * inv_std       # (N, 1)
    shift = beta_ref[...].astype(jnp.float32) - mean * scale   # (N, 1)
    o_ref[...] = (y * scale + shift).astype(o_ref.dtype)


# --------------------------------------------------------------------------
# Wrappers.
# --------------------------------------------------------------------------
def _gln_resident(y, gamma, beta, *, inv_nk, kp, vmem_cap):
    M, N, K = y.shape
    y_p = jnp.pad(y, ((0, 0), (0, 0), (0, kp - K))) if kp != K else y

    block_bytes = N * kp * jnp.dtype(y.dtype).itemsize
    # 2x double-buffer * (in + out) blocks + f32 temporaries + headroom.
    needed = 4 * block_bytes + 3 * N * kp * 4 + (4 << 20)
    vmem_limit = min(max(int(needed), 32 << 20), int(vmem_cap * 9 // 10))

    kernel = functools.partial(_gln_resident_kernel, inv_nk=inv_nk)
    out = pl.pallas_call(
        kernel,
        out_shape=jax.ShapeDtypeStruct((M, N, kp), y.dtype),
        grid_spec=pltpu.PrefetchScalarGridSpec(
            num_scalar_prefetch=0,
            grid=(M,),
            in_specs=[
                pl.BlockSpec((pl.Squeezed(), N, kp), lambda m: (m, 0, 0)),
                pl.BlockSpec((pl.Squeezed(), N, 1), lambda m: (0, 0, 0)),
                pl.BlockSpec((pl.Squeezed(), N, 1), lambda m: (0, 0, 0)),
            ],
            out_specs=pl.BlockSpec((pl.Squeezed(), N, kp), lambda m: (m, 0, 0)),
        ),
        compiler_params=pltpu.CompilerParams(
            dimension_semantics=("parallel",),
            vmem_limit_bytes=vmem_limit,
        ),
    )(y_p, gamma, beta)
    return out[:, :, :K] if kp != K else out


def _gln_tiled(y, gamma, beta, *, inv_nk, tile_k, vmem_cap):
    M, N, K = y.shape
    itemsize = jnp.dtype(y.dtype).itemsize

    if tile_k is None:
        # Target ~2 MiB per y block, lane-aligned.
        tile_k = max(_LANE, ((2 << 20) // (N * itemsize)) // _LANE * _LANE)
    tile_k = max(_LANE, (tile_k // _LANE) * _LANE)
    tile_k = min(tile_k, _round_up(K, _LANE))
    kp = _round_up(K, tile_k)
    nkt = kp // tile_k

    y_p = jnp.pad(y, ((0, 0), (0, 0), (0, kp - K))) if kp != K else y

    block_bytes = N * tile_k * itemsize
    needed = 4 * block_bytes + 3 * N * tile_k * 4 + (4 << 20)
    vmem_limit = min(max(int(needed), 32 << 20), int(vmem_cap * 9 // 10))

    # Pass 1: per-batch-element sum / sum-of-squares (accumulate over K tiles).
    sum_y, sum_yy = pl.pallas_call(
        _gln_stats_kernel,
        out_shape=(
            jax.ShapeDtypeStruct((M, 1, 1), jnp.float32),
            jax.ShapeDtypeStruct((M, 1, 1), jnp.float32),
        ),
        grid_spec=pltpu.PrefetchScalarGridSpec(
            num_scalar_prefetch=0,
            grid=(M, nkt),
            in_specs=[
                pl.BlockSpec((pl.Squeezed(), N, tile_k), lambda m, k: (m, 0, k)),
            ],
            out_specs=(
                pl.BlockSpec((pl.Squeezed(), 1, 1), lambda m, k: (m, 0, 0)),
                pl.BlockSpec((pl.Squeezed(), 1, 1), lambda m, k: (m, 0, 0)),
            ),
        ),
        compiler_params=pltpu.CompilerParams(
            dimension_semantics=("parallel", "arbitrary"),
            vmem_limit_bytes=vmem_limit,
        ),
    )(y_p)

    # Pass 2: normalize + affine, fully parallel over (M, K tiles).
    kernel2 = functools.partial(_gln_norm_kernel, inv_nk=inv_nk)
    out = pl.pallas_call(
        kernel2,
        out_shape=jax.ShapeDtypeStruct((M, N, kp), y.dtype),
        grid_spec=pltpu.PrefetchScalarGridSpec(
            num_scalar_prefetch=0,
            grid=(M, nkt),
            in_specs=[
                pl.BlockSpec((pl.Squeezed(), N, tile_k), lambda m, k: (m, 0, k)),
                pl.BlockSpec((pl.Squeezed(), N, 1), lambda m, k: (0, 0, 0)),
                pl.BlockSpec((pl.Squeezed(), N, 1), lambda m, k: (0, 0, 0)),
                pl.BlockSpec((pl.Squeezed(), 1, 1), lambda m, k: (m, 0, 0)),
                pl.BlockSpec((pl.Squeezed(), 1, 1), lambda m, k: (m, 0, 0)),
            ],
            out_specs=pl.BlockSpec((pl.Squeezed(), N, tile_k), lambda m, k: (m, 0, k)),
        ),
        compiler_params=pltpu.CompilerParams(
            dimension_semantics=("parallel", "parallel"),
            vmem_limit_bytes=vmem_limit,
        ),
    )(y_p, gamma, beta, sum_y, sum_yy)
    return out[:, :, :K] if kp != K else out


def global_layer_norm(y, gamma, beta, *, max_resident_bytes=None, tile_k=None):
    """gLN forward.  y: [M, N, K], gamma/beta: [1, N, 1] -> [M, N, K]."""
    M, N, K = y.shape
    assert gamma.shape == (1, N, 1) and beta.shape == (1, N, 1)

    inv_nk = 1.0 / float(N * K)          # true denominator (excludes padding)
    vmem_cap = _vmem_cap_bytes()
    if max_resident_bytes is None:
        # Resident path holds double-buffered in+out slabs (+ f32 temps).
        max_resident_bytes = vmem_cap // 8

    kp = _round_up(K, _LANE)
    slab_bytes = N * kp * 4              # f32 working size of one (N, Kp) slab
    if slab_bytes <= max_resident_bytes:
        return _gln_resident(y, gamma, beta, inv_nk=inv_nk, kp=kp, vmem_cap=vmem_cap)
    return _gln_tiled(y, gamma, beta, inv_nk=inv_nk, tile_k=tile_k, vmem_cap=vmem_cap)


def reference_gln(y, gamma, beta):
    # Pure-JAX reference mirroring the PyTorch forward exactly.
    mean = jnp.mean(jnp.mean(y, axis=1, keepdims=True), axis=2, keepdims=True)
    var = jnp.mean(
        jnp.mean((y - mean) ** 2, axis=1, keepdims=True), axis=2, keepdims=True
    )
    return gamma * (y - mean) / jnp.power(var + EPS, 0.5) + beta


if __name__ == "__main__":
    # Small shapes consistent with the module: [M, N, K].
    # K deliberately not a multiple of 128 to exercise lane padding + the
    # true-N*K denominator.
    M, N, K = 2, 8, 200

    key = jax.random.PRNGKey(0)
    ky, kg, kb = jax.random.split(key, 3)
    y = jax.random.normal(ky, (M, N, K), dtype=jnp.float32)
    # Deterministic non-trivial affine params (module default is 1 / 0).
    gamma = 1.0 + 0.1 * jax.random.normal(kg, (1, N, 1), dtype=jnp.float32)
    beta = 0.1 * jax.random.normal(kb, (1, N, 1), dtype=jnp.float32)

    ref = reference_gln(y, gamma, beta)

    # Resident single-pass path (default for shapes whose slab fits VMEM).
    out_resident = jax.block_until_ready(global_layer_norm(y, gamma, beta))
    assert out_resident.shape == (M, N, K)
    assert jnp.allclose(out_resident, ref, atol=1e-4, rtol=1e-4)

    # K-tiled two-pass path (what large ConvTasNet shapes use, esp. on v7x);
    # force it here with a zero residency budget and a 128-lane tile.
    out_tiled = jax.block_until_ready(
        global_layer_norm(y, gamma, beta, max_resident_bytes=0, tile_k=128)
    )
    assert out_tiled.shape == (M, N, K)
    assert jnp.allclose(out_tiled, ref, atol=1e-4, rtol=1e-4)

    print("KERNEL_OK")
</pallas_src>

<mosaic_0001>
module attributes {stable_mosaic.version = 11 : i64} {
  func.func @_gln_resident_kernel(%arg0: i32, %arg1: memref<1x8x256xf32, #tpu.memory_space<vmem>>, %arg2: memref<1x8x1xf32, #tpu.memory_space<vmem>>, %arg3: memref<1x8x1xf32, #tpu.memory_space<vmem>>, %arg4: memref<1x8x256xf32, #tpu.memory_space<vmem>>) attributes {dimension_semantics = [#tpu.dimension_semantics<parallel>], iteration_bounds = array<i64: 2>, scalar_prefetch = 0 : i64, scratch_operands = 0 : i64, tpu.core_type = #tpu.core_type<tc>, window_params = [{transform_indices = @transform_0, window_bounds = array<i64: 1, 8, 256>}, {pipeline_mode = #tpu.pipeline_mode<synchronous>, transform_indices = @transform_1, window_bounds = array<i64: 1, 8, 1>}, {pipeline_mode = #tpu.pipeline_mode<synchronous>, transform_indices = @transform_2, window_bounds = array<i64: 1, 8, 1>}, {transform_indices = @transform_3, window_bounds = array<i64: 1, 8, 256>}]} {
    %c0 = arith.constant 0 : index
    %c0_0 = arith.constant 0 : index
    %c0_1 = arith.constant 0 : index
    %0 = vector.load %arg1[%c0, %c0_0, %c0_1] : memref<1x8x256xf32, #tpu.memory_space<vmem>>, vector<1x8x256xf32>
    %1 = vector.shape_cast %0 : vector<1x8x256xf32> to vector<8x256xf32>
    %2 = vector.shape_cast %1 : vector<8x256xf32> to vector<1x8x256xf32>
    %cst = arith.constant dense<0.000000e+00> : vector<1xf32>
    %3 = vector.multi_reduction <add>, %2, %cst [1, 2] : vector<1x8x256xf32> to vector<1xf32>
    %4 = vector.shape_cast %3 : vector<1xf32> to vector<1x1x1xf32>
    %5 = vector.extract %4[0, 0, 0] : f32 from vector<1x1x1xf32>
    %6 = arith.mulf %1, %1 : vector<8x256xf32>
    %7 = vector.shape_cast %6 : vector<8x256xf32> to vector<1x8x256xf32>
    %cst_2 = arith.constant dense<0.000000e+00> : vector<1xf32>
    %8 = vector.multi_reduction <add>, %7, %cst_2 [1, 2] : vector<1x8x256xf32> to vector<1xf32>
    %9 = vector.shape_cast %8 : vector<1xf32> to vector<1x1x1xf32>
    %10 = vector.extract %9[0, 0, 0] : f32 from vector<1x1x1xf32>
    %cst_3 = arith.constant 6.250000e-04 : f32
    %11 = arith.mulf %5, %cst_3 : f32
    %cst_4 = arith.constant 6.250000e-04 : f32
    %12 = arith.mulf %10, %cst_4 : f32
    %13 = arith.mulf %11, %11 : f32
    %14 = arith.subf %12, %13 : f32
    %cst_5 = arith.constant 0.000000e+00 : f32
    %15 = arith.maximumf %14, %cst_5 : f32
    %cst_6 = arith.constant 9.99999993E-9 : f32
    %16 = arith.addf %15, %cst_6 : f32
    %17 = math.rsqrt %16 : f32
    %c0_7 = arith.constant 0 : index
    %c0_8 = arith.constant 0 : index
    %c0_9 = arith.constant 0 : index
    %18 = vector.load %arg2[%c0_7, %c0_8, %c0_9] : memref<1x8x1xf32, #tpu.memory_space<vmem>>, vector<1x8x1xf32>
    %19 = vector.shape_cast %18 : vector<1x8x1xf32> to vector<8x1xf32>
    %c0_10 = arith.constant 0 : index
    %c0_11 = arith.constant 0 : index
    %c0_12 = arith.constant 0 : index
    %20 = vector.load %arg3[%c0_10, %c0_11, %c0_12] : memref<1x8x1xf32, #tpu.memory_space<vmem>>, vector<1x8x1xf32>
    %21 = vector.shape_cast %20 : vector<1x8x1xf32> to vector<8x1xf32>
    %22 = vector.broadcast %17 : f32 to vector<8x1xf32>
    %23 = arith.mulf %19, %22 : vector<8x1xf32>
    %24 = vector.broadcast %11 : f32 to vector<8x1xf32>
    %25 = arith.mulf %24, %23 : vector<8x1xf32>
    %26 = arith.subf %21, %25 : vector<8x1xf32>
    %27 = vector.broadcast %23 : vector<8x1xf32> to vector<8x256xf32>
    %28 = arith.mulf %1, %27 : vector<8x256xf32>
    %29 = vector.broadcast %26 : vector<8x1xf32> to vector<8x256xf32>
    %30 = arith.addf %28, %29 : vector<8x256xf32>
    %c0_13 = arith.constant 0 : index
    %c0_14 = arith.constant 0 : index
    %c0_15 = arith.constant 0 : index
    %31 = vector.load %arg4[%c0_13, %c0_14, %c0_15] : memref<1x8x256xf32, #tpu.memory_space<vmem>>, vector<1x8x256xf32>
    %32 = vector.shape_cast %31 : vector<1x8x256xf32> to vector<8x256xf32>
    %33 = vector.shape_cast %30 : vector<8x256xf32> to vector<1x8x256xf32>
    tpu.vector_store %arg4[%c0_13, %c0_14, %c0_15], %33 {strides = array<i32>} : memref<1x8x256xf32, #tpu.memory_space<vmem>>, vector<1x8x256xf32>,
    return
  }
  func.func @transform_0(%arg0: i32) -> (i32, i32, i32) {
    %c0_i32 = arith.constant 0 : i32
    %c0_i32_0 = arith.constant 0 : i32
    %c0_i32_1 = arith.constant 0 : i32
    return %arg0, %c0_i32, %c0_i32_0 : i32, i32, i32
  }
  func.func @transform_1(%arg0: i32) -> (i32, i32, i32) {
    %c0_i32 = arith.constant 0 : i32
    %c0_i32_0 = arith.constant 0 : i32
    %c0_i32_1 = arith.constant 0 : i32
    %c0_i32_2 = arith.constant 0 : i32
    return %c0_i32, %c0_i32_0, %c0_i32_1 : i32, i32, i32
  }
  func.func @transform_2(%arg0: i32) -> (i32, i32, i32) {
    %c0_i32 = arith.constant 0 : i32
    %c0_i32_0 = arith.constant 0 : i32
    %c0_i32_1 = arith.constant 0 : i32
    %c0_i32_2 = arith.constant 0 : i32
    return %c0_i32, %c0_i32_0, %c0_i32_1 : i32, i32, i32
  }
  func.func @transform_3(%arg0: i32) -> (i32, i32, i32) {
    %c0_i32 = arith.constant 0 : i32
    %c0_i32_0 = arith.constant 0 : i32
    %c0_i32_1 = arith.constant 0 : i32
    return %arg0, %c0_i32, %c0_i32_0 : i32, i32, i32
  }
}

</mosaic_0001>

<bundles_post_ra>
// kernel: tpu_custom_call.1
= control target key start
LH: loop header
LB: loop body
LE: loop exit
PB: predicated region body
PF: predicated region fallthrough
CT: control target
= control target key end

     0   :  { %8 = vsyncpa [#allocation3], 0  ;;  %s695_s0 = inlined_call_operand.hbm [shape: f32[2,8,256], index: 0, kind: input, shape index: {}]   ;;  %s696_s1 = inlined_call_operand.vmem [shape: f32[1,8,1], index: 1, kind: input, shape index: {}]   ;;  %s697_s2 = inlined_call_operand.vmem [shape: f32[1,8,1], index: 2, kind: input, shape index: {}]   ;;  %s698_s3 = inlined_call_operand.hbm [shape: f32[2,8,256], index: 3, kind: output, shape index: {}]  }
   0x1   :  { %10 = vsyncpa [#allocation3 + $0x1], 0 }
   0x2   :  { %11 = vsyncpa [#allocation4], 0 }
   0x3   :  { %13 = vsyncpa [#allocation4 + $0x1], 0  ;;  %s524_s12 = smov 0   ;;  %s526_s13 = smov 0  }
   0x4   :  { %s528_s14 = smov 0   ;;  %s530_s15 = smov 0  }
   0x5 LB: > { %s545_s16 = sadd.s32 4294967295, %s498_s15   ;;  %s328_s17 = sadd.s32 4294967294, %s498_s15   ;;  %s498_s15 = sphi %s530_s15, %s713_s15   ;;  %s494_s14 = sphi %s528_s14, %s712_s14   ;;  %s490_s13 = sphi %s526_s13, %s711_s13   ;;  %s486_s12 = sphi %s524_s12, %s710_s12  }
   0x6   : > { %s549_s18 = sadd.s32 1, %s498_s15   ;;  %s26_s19 = sadd.s32 1, %s494_s14 }
   0x7   : > { %s23_s20 = ssub.s32 %s498_s15, %s549_s18  ;;  %p33_p0 = scmp.ne.s32.totalorder %s494_s14, %s490_s13 }
   0x8   : > { %p24_p1 = scmp.eq.s32.totalorder %s23_s20, 0  ;;  %p34_p2 = scmp.eq.s32.totalorder %s498_s15, 0 }
   0x9   : > { %p39_p3 = scmp.ne.s32.totalorder %s490_s13, %s486_s12  ;;  %p40_p4 = scmp.eq.s32.totalorder %s545_s16, 0 }
   0xa   : > { %s561_s21 = scalar_select %p24_p1, %s494_s14, %s26_s19  }
   0xb   : > { %p563_p5 = por %p34_p2, %p33_p0  ;;  %p567_p6 = por %p40_p4, %p39_p3 }
   0xc   : > { %p105_p7 = scmp.eq.s32.totalorder %s545_s16, 1  ;;  %p111_p8 = scmp.eq.s32.totalorder %s328_s17, 1 }
   0xd   : > { %p362_p10 = scmp.lt.s32.totalorder %s498_s15, 2  ;;  %s137_s26 = sand.u32 1, %s494_s14  }
   0xe   : > { %p574_p11 = por %p105_p7, %p33_p0  ;;  %p578_p12 = por %p111_p8, %p39_p3 }
   0xf   : > { %s342_s27 = sshll.u32 %s498_s15, 8  ;;  %s331_s28 = sshll.u32 %s137_s26, 4 }
  0x10   : > { %s702_s24 = scalar_select %p574_p11, 1, 0 }
  0x11   : > { %s703_s25 = scalar_select %p578_p12, 1, 0 }
  0x12   : > { %s587_s4 = scalar_lea.hbm %s695_s0, %s342_s27  ;;  %s141_s5 = scalar_lea.vmem [#allocation2], %s331_s28 }
  0x13   : > { %s149_s6 = sshll.u32 %s141_s5, 4  ;;  %p591_p13 = pnand %p362_p10, %p563_p5  ;;  %s595_s6 = int_to_ptr.vmem [resolvable:$true] %s149_s6 }
  0x14   : > { %s138_s8 = scalar_lea.sflag [#allocation3], %s137_s26  ;;  %s402_s9 = scalar_lea.hbm %s587_s4, 256 }
  0x15   : > { %p403_p2 = scmp.ne.s32.totalorder %s587_s4, %s402_s9  ;;  %p404_p3 = pneg %p591_p13 }
  0x16   : > { %s407_s17 = scalar_lea.hbm %s695_s0, 512  ;;  %p408_p5 = scmp.lt.u32.totalorder %s587_s4, %s695_s0 }
  0x17   : > { %p405_p4 = pnand %p404_p3, %p403_p2  ;;  %p409_p8 = scmp.lt.u32.totalorder %s407_s17, %s402_s9 }
  0x18   : > { %p411_p9 = scmp.lt.u32.totalorder %s402_s9, %s587_s4 }
  0x19   : > { %p406_p7 = pneg %p405_p4  ;;  %p410_p10 = por %p409_p8, %p408_p5 }
  0x1b   : > { %p412_p0 = por %p411_p9, %p410_p10 }
  0x1d   : > { %p413_p1 = pnand %p412_p0, %p406_p7 }
  0x1f   : > { %416 = shalt.err (!%p413_p1)
}
  0x20   : > { %s417_s22 = scalar_lea.vmem %s595_s6, 256  ;;  %s500_s26 = smov [#allocation2]  }
  0x21   : > { %p418_p2 = scmp.ne.s32.totalorder %s595_s6, %s417_s22  ;;  %s422_s27 = sshll.u32 %s500_s26, 4  ;;  %s423_s27 = int_to_ptr.vmem [resolvable:$false] %s422_s27 }
  0x22   : > { %s424_s28 = scalar_lea.vmem %s423_s27, 512  ;;  %p425_p11 = scmp.lt.s32.totalorder %s595_s6, %s423_s27 }
  0x23   : > { %p420_p4 = pnand %p418_p2, %p404_p3  ;;  %p426_p5 = scmp.lt.s32.totalorder %s424_s28, %s417_s22 }
  0x25   : > { %p421_p12 = pneg %p420_p4  ;;  %p427_p8 = por %p426_p5, %p425_p11 }
  0x27   : > { %p428_p9 = pnand %p427_p8, %p421_p12 }
  0x29   : > { %431 = shalt.err (!%p428_p9)
}
  0x2a   : > { %357 = dma.hbm_to_vmem [thread:$0]  (!%p591_p13), %s587_s4, 256, %s595_s6, %s138_s8  }
  0x2b   : > { %p705_p0 = scmp.lt.s32.totalorder %s498_s15, 3  ;;  %p706_p1 = scmp.ge.s32.totalorder %s498_s15, 1 }
  0x2d   : > { %p155_p3 = pnand %p706_p1, %p705_p0 }
  0x2e   : > { %s629_s29 = sand.u32 (!%p155_p3), 1, %s490_s13  }
  0x2f   : > { %158 = sbr.rel (%p155_p3) target bundleno = 486 (0x1e6), region = 32  ;;  %s335_s30 = sshll.u32 (!%p155_p3), %s629_s29, 4 }
  0x30   : > { %s161_s5 = scalar_lea.sflag (!%p155_p3), [#allocation3], %s629_s29  ;;  %s164_s7 = scalar_lea.vmem (!%p155_p3), [#allocation2], %s335_s30 }
  0x36   : > { %477 = dma.done.wait (%p567_p6), %s161_s5, 256  }
  0x37   : > { %479 = vsyncadd (%p567_p6), %s161_s5, 4294967040  ;;  %v187_v0 = vld [vmem:[%s164_s7] sm:$0xff]  ;;  %v188_v1 = vld [vmem:[%s164_s7 + $0x8] sm:$0xff]  ;;  %v501_v16 = vmov 0   ;;  %s502_s11 = smov 0.0   ;;  %s343_s5 = sshll.u32 %s545_s16, 8 }
  0x38   : > { %v189_v2 = vadd.f32 %v188_v1, %v187_v0  ;;  %v199_v3 = vmul.f32 %v187_v0, %v187_v0  ;;  %v200_v4 = vmul.f32 %v188_v1, %v188_v1  ;;  %398 = vset.pattern.permute.xlu1 %v501_v16  ;;  %399 = vset.pattern.permute.xlu0 %v501_v16  ;;  %v220_v23 = vld [vmem:[%s696_s1] sm:$0xff]  ;;  %s186_s7 = scalar_lea.vmem [#allocation5], %s335_s30  ;;  %s244_s16 = scalar_lea.sflag [#allocation4], %s629_s29 }
  0x39   : > { %v221_v27 = vld [vmem:[%s697_s2] sm:$0xff]  ;;  %p707_p11 = scmp.ne.s32.totalorder %s702_s24, 0 }
  0x3a   : > { %190 = vadd.xlane.f32.xlu0 %v189_v2  ;;  %v201_v5 = vadd.f32 %v200_v4, %v199_v3 }
  0x3e   : > { %202 = vadd.xlane.f32.xlu0 %v201_v5 }
  0xc7   : > { %v191_v6 = vpop.xlane.xlu0 %190 }
  0xc8   : > { %v192_v7 = vrot.slane %v191_v6, 4 }
  0xca   : > { %v193_v8 = vadd.f32 %v192_v7, %v191_v6 }
  0xcb   : > { %v203_v9 = vpop.xlane.xlu0 %202 }
  0xcc   : > { %v194_v10 = vrot.slane %v193_v8, 2  ;;  %v204_v11 = vrot.slane %v203_v9, 4 }
  0xce   : > { %v205_v12 = vadd.f32 %v204_v11, %v203_v9  ;;  %v195_v13 = vadd.f32 %v194_v10, %v193_v8 }
  0xd0   : > { %v206_v14 = vrot.slane %v205_v12, 2  ;;  %v196_v15 = vrot.slane %v195_v13, 1 }
  0xd2   : > { %v207_v17 = vadd.f32 %v206_v14, %v205_v12  ;;  %v197_v18 = vadd.f32 %v196_v15, %v195_v13 }
  0xd4   : > { %344 = vpush %v197_v18  ;;  %v208_v19 = vrot.slane %v207_v17, 1 }
  0xd6   : > { %v209_v20 = vadd.f32 %v208_v19, %v207_v17 }
  0xd8   : > { %346 = vpush %v209_v20 }
 0x105   : > { %s345_s23 = spop %344 }
 0x106   : > { %s211_s4 = smul.f32 0.000625, %s345_s23  ;;  %s258_s23 = sshll.u32 %s186_s7, 4  ;;  %s653_s23 = int_to_ptr.vmem [resolvable:$true] %s258_s23 }
 0x107   : > { %s432_s30 = scalar_lea.vmem %s653_s23, 256 }
 0x108   : > { %s213_s6 = smul.f32 %s211_s4, %s211_s4  ;;  %v224_v26 = vstv %s211_s4  ;;  %p433_p6 = scmp.ne.s32.totalorder %s653_s23, %s432_s30 }
 0x109   : > { %s347_s8 = spop %346 }
 0x10a   : > { %s212_s9 = smul.f32 0.000625, %s347_s8  ;;  %s651_s8 = scalar_lea.hbm %s698_s3, %s343_s5 }
 0x10b   : > { %p434_p12 = pnand %p433_p6, %p707_p11 }
 0x10c   : > { %s214_s10 = ssub.f32 %s212_s9, %s213_s6  ;;  %s503_s9 = smov [#allocation5]  }
 0x10d   : > { %p435_p13 = pneg %p434_p12 }
 0x10e   : > { %s215_s17 = smax.f32 %s502_s11, %s214_s10  ;;  %s436_s10 = sshll.u32 %s503_s9, 4  ;;  %s437_s10 = int_to_ptr.vmem [resolvable:$false] %s436_s10 }
 0x10f   : > { %s216_s19 = sadd.f32 1e-08, %s215_s17  ;;  %s438_s11 = scalar_lea.vmem %s437_s10, 512 }
 0x110   : > { %p439_p7 = scmp.lt.s32.totalorder %s653_s23, %s437_s10  ;;  %p440_p10 = scmp.lt.s32.totalorder %s438_s11, %s432_s30 }
 0x111   : > { %v217_v21 = vstv %s216_s19 }
 0x112   : > { %400 = vrsqrt.f32 %v217_v21  ;;  %p441_p2 = por %p440_p10, %p439_p7 }
 0x114   : > { %p442_p4 = pnand %p441_p2, %p435_p13 }
 0x11c   : > { %v401_v22 = vpop.eup %400 }
 0x11d   : > { %348 = vpush %v401_v22 }
 0x14e   : > { %s349_s26 = spop %348 }
 0x14f   : > { %v222_v24 = vstv %s349_s26 }
 0x150   : > { %v223_v25 = vmul.f32 %v222_v24, %v220_v23 }
 0x152   : > { %v225_v28 = vmul.f32 %v224_v26, %v223_v25  ;;  %229 = vperm.xlu1 %398, %v223_v25  }
 0x154   : > { %v226_v29 = vsub.f32 %v221_v27, %v225_v28 }
 0x156   : > { %236 = vperm.xlu1 %398, %v226_v29  }
 0x1d1   : > { %v230_v30 = vpop.permute.xlu1 %229 }
 0x1d2   : > { %v232_v31 = vmul.f32 %v230_v30, %v187_v0  ;;  %v233_v32 = vmul.f32 %v230_v30, %v188_v1 }
 0x1d5   : > { %v237_v33 = vpop.permute.xlu1 %236 }
 0x1d6   : > { %v239_v34 = vadd.f32 %v237_v33, %v232_v31  ;;  %v240_v35 = vadd.f32 %v237_v33, %v233_v32 }
 0x1d8   : > { %241 = vst [vmem:[%s186_s7] sm:$0xff] %v239_v34  ;;  %242 = vst [vmem:[%s186_s7 + $0x8] sm:$0xff] %v240_v35 }
 0x1d9   : > { %445 = shalt.err (!%p442_p4)
}
 0x1da   : > { %s446_s29 = scalar_lea.hbm %s651_s8, 256  ;;  %s450_s20 = scalar_lea.hbm %s698_s3, 512 }
 0x1db   : > { %p447_p5 = scmp.ne.s32.totalorder %s651_s8, %s446_s29  ;;  %p451_p0 = scmp.lt.u32.totalorder %s651_s8, %s698_s3 }
 0x1dc   : > { %p452_p1 = scmp.lt.u32.totalorder %s450_s20, %s446_s29  ;;  %p454_p6 = scmp.lt.u32.totalorder %s446_s29, %s651_s8 }
 0x1dd   : > { %p448_p8 = pnand %p447_p5, %p707_p11 }
 0x1de   : > { %p453_p3 = por %p452_p1, %p451_p0 }
 0x1df   : > { %p449_p9 = pneg %p448_p8 }
 0x1e0   : > { %p455_p12 = por %p454_p6, %p453_p3 }
 0x1e2   : > { %p456_p13 = pnand %p455_p12, %p449_p9 }
 0x1e4   : > { %459 = shalt.err (!%p456_p13)
}
 0x1e5   : > { %352 = dma.vmem_to_hbm [thread:$0]  (%p707_p11), %s653_s23, 256, %s651_s8, %s244_s16  }
 0x1e6 PF: > { %s270_s27 = sand.u32 1, %s486_s12   ;;  %p708_p7 = scmp.ne.s32.totalorder %s703_s25, 0 }
 0x1e7   : > { %p709_p10 = scmp.ge.s32.totalorder %s498_s15, 2  ;;  %s271_s28 = scalar_lea.sflag [#allocation4], %s270_s27 }
 0x1e9   : > { %p359_p2 = pnand %p709_p10, %p708_p7 }
 0x1eb   : > { %481 = dma.done.wait (!%p359_p2), %s271_s28, 256  }
 0x1ec   : > { %483 = vsyncadd (!%p359_p2), %s271_s28, 4294967040  ;;  %p16_p4 = scmp.ge.s32.totalorder %s549_s18, 4   ;;  %s710_s12 = smov %s490_s13 }
 0x1ed   : > { %s711_s13 = smov %s494_s14  ;;  %s712_s14 = smov %s561_s21 }
 0x1ee   : > { %s713_s15 = smov %s549_s18  ;;  %18 = sbr.rel (!%p16_p4) target bundleno = 5 (0x5), region = 77 }
 0x1f5   :  { %276 = vsyncpa [#allocation3], 1 }
 0x1f6   :  { %278 = vsyncpa [#allocation3 + $0x1], 1 }
 0x1f7   :  { %279 = vsyncpa [#allocation4], 1 }
 0x1f8   :  { %281 = vsyncpa [#allocation4 + $0x1], 1 }

</bundles_post_ra>
